<compile_context>
chip_gen: v5e
topology: v5e:2x2
jax: 0.10.0
libtpu: 0.0.40
codegen_flags: <defaults>
</compile_context>

<pallas_src>
import functools

import jax
import jax.numpy as jnp
from jax.experimental import pallas as pl
from jax.experimental.pallas import tpu as pltpu


# ----------------------------- tiling helpers --------------------------------


def _pick_pixel_tile(hw, max_tile=4096):
    """Largest lane-friendly tile of the flattened-pixel axis that divides hw."""
    if hw <= max_tile:
        return hw
    for t in range(max_tile, 127, -128):
        if hw % t == 0:
            return t
    return hw


def _pick_row_tile(h, max_rows=256):
    if h <= max_rows:
        return h
    for t in range(max_rows, 7, -8):
        if h % t == 0:
            return t
    return h


# ----------------------- conv as channel-major matmul -------------------------


def _conv_mm_kernel(cols_ref, w_ref, b_ref, o_ref, *, relu):
    # cols: (1, Kp, T), w: (C_out, Kp) resident, b: (C_out, 1) resident.
    acc = jnp.dot(w_ref[...], cols_ref[0], preferred_element_type=jnp.float32)
    acc = acc + b_ref[...]
    if relu:
        acc = jnp.maximum(acc, 0.0)
    o_ref[0] = acc.astype(o_ref.dtype)


def _im2col_channel_major(x, kh, kw):
    # (N, C, H, W) -> (N, C*kh*kw, H*W), stride 1, 'same' padding.
    # Channel-major patch order matches PyTorch's (C_out, C_in, kh, kw) weights.
    N, C, H, W = x.shape
    ph, pw = kh // 2, kw // 2
    xp = jnp.pad(x, ((0, 0), (0, 0), (ph, ph), (pw, pw)))
    patches = [xp[:, :, i:i + H, j:j + W] for i in range(kh) for j in range(kw)]
    cols = jnp.stack(patches, axis=2)            # (N, C, kh*kw, H, W): no transpose
    return cols.reshape(N, C * kh * kw, H * W)


def conv2d_same(x, weight, bias, relu=False):
    """Stride-1 'same' conv, NCHW in / NCHW out, computed channel-major on the MXU."""
    N, C_in, H, W = x.shape
    C_out, _, kh, kw = weight.shape
    HW = H * W
    K = C_in * kh * kw
    Kp = ((K + 7) // 8) * 8                      # pad K to a sublane multiple

    cols = _im2col_channel_major(x, kh, kw)
    if Kp != K:
        cols = jnp.pad(cols, ((0, 0), (0, Kp - K), (0, 0)))
    w2 = weight.reshape(C_out, K).astype(jnp.float32)
    if Kp != K:
        w2 = jnp.pad(w2, ((0, 0), (0, Kp - K)))
    b2 = bias.reshape(C_out, 1).astype(jnp.float32)

    T = _pick_pixel_tile(HW)
    out = pl.pallas_call(
        functools.partial(_conv_mm_kernel, relu=relu),
        out_shape=jax.ShapeDtypeStruct((N, C_out, HW), jnp.float32),
        grid=(N, HW // T),
        in_specs=[
            pl.BlockSpec((1, Kp, T), lambda n, t: (n, 0, t)),
            pl.BlockSpec((C_out, Kp), lambda n, t: (0, 0)),   # resident weights
            pl.BlockSpec((C_out, 1), lambda n, t: (0, 0)),    # resident bias
        ],
        out_specs=pl.BlockSpec((1, C_out, T), lambda n, t: (n, 0, t)),
        compiler_params=pltpu.CompilerParams(
            dimension_semantics=("parallel", "parallel")),
    )(cols, w2, b2)
    return out.reshape(N, C_out, H, W)           # contiguous reshape, no transpose


# -------------- fused LocKernelLayer conv + (!= 0) -> int32 gt map ------------


def _loc_gt_kernel(w_ref, b_ref, xp_ref, o_ref, *, H, W, kh, kw):
    # 1->1 channel 'same' conv done as shifted adds (VPU), then the bool cast.
    x = xp_ref[0, 0]                                       # (Hp, Wp)
    s = jnp.zeros((H, W), jnp.float32) + b_ref[0]
    for i in range(kh):
        for j in range(kw):
            s = s + w_ref[i * kw + j] * x[i:i + H, j:j + W]
    o_ref[0, 0] = (s != 0.0).astype(jnp.int32)


def loc_gt_map(dot_map, loc_w, loc_b):
    N, C, H, W = dot_map.shape
    assert C == 1 and loc_w.shape[0] == 1 and loc_w.shape[1] == 1
    kh, kw = loc_w.shape[2], loc_w.shape[3]
    ph, pw = kh // 2, kw // 2
    xp = jnp.pad(dot_map, ((0, 0), (0, 0), (ph, ph), (pw, pw)))
    Hp, Wp = H + 2 * ph, W + 2 * pw
    return pl.pallas_call(
        functools.partial(_loc_gt_kernel, H=H, W=W, kh=kh, kw=kw),
        out_shape=jax.ShapeDtypeStruct((N, 1, H, W), jnp.int32),
        grid=(N,),
        in_specs=[
            pl.BlockSpec((kh * kw,), lambda n: (0,),
                         memory_space=pltpu.MemorySpace.SMEM),
            pl.BlockSpec((1,), lambda n: (0,),
                         memory_space=pltpu.MemorySpace.SMEM),
            pl.BlockSpec((1, 1, Hp, Wp), lambda n: (n, 0, 0, 0)),
        ],
        out_specs=pl.BlockSpec((1, 1, H, W), lambda n: (n, 0, 0, 0)),
        compiler_params=pltpu.CompilerParams(dimension_semantics=("parallel",)),
    )(loc_w.reshape(-1).astype(jnp.float32),
      loc_b.reshape(-1).astype(jnp.float32), xp)


# -------------------- class-weighted 2-class cross entropy --------------------


def _wce_kernel(cw_ref, dm_ref, gt_ref, loss_ref, num_ref, den_ref):
    n, r = pl.program_id(0), pl.program_id(1)
    is_first = jnp.logical_and(n == 0, r == 0)
    is_last = jnp.logical_and(n == pl.num_programs(0) - 1,
                              r == pl.num_programs(1) - 1)

    @pl.when(is_first)
    def _():
        num_ref[...] = jnp.zeros_like(num_ref)
        den_ref[...] = jnp.zeros_like(den_ref)

    l0 = dm_ref[0, 0]                           # (TH, W) lane-dense logit planes
    l1 = dm_ref[0, 1]
    t_f = gt_ref[0, 0].astype(jnp.float32)      # target in {0, 1}
    d = l1 - l0
    z = d * (1.0 - 2.0 * t_f)                   # = l_other - l_target
    # -log_softmax(target) for 2 classes = softplus(z), computed stably (EUP).
    nll = jnp.maximum(z, 0.0) + jnp.log(1.0 + jnp.exp(-jnp.abs(z)))
    w_t = cw_ref[0] * (1.0 - t_f) + cw_ref[1] * t_f
    num_ref[...] += jnp.sum(w_t * nll, keepdims=True)
    den_ref[...] += jnp.sum(w_t, keepdims=True)

    @pl.when(is_last)
    def _():
        loss_ref[...] = num_ref[...] / den_ref[...]


def weighted_cross_entropy_2class(density_map, gt_map, class_weight):
    # density_map: (N, 2, H, W) logits; gt_map: (N, 1, H, W) int in {0, 1}.
    N, C, H, W = density_map.shape
    assert C == 2
    TH = _pick_row_tile(H)
    loss = pl.pallas_call(
        _wce_kernel,
        out_shape=jax.ShapeDtypeStruct((1, 1), jnp.float32),
        grid=(N, H // TH),
        in_specs=[
            pl.BlockSpec((2,), lambda n, r: (0,),
                         memory_space=pltpu.MemorySpace.SMEM),
            pl.BlockSpec((1, 2, TH, W), lambda n, r: (n, 0, r, 0)),
            pl.BlockSpec((1, 1, TH, W), lambda n, r: (n, 0, r, 0)),
        ],
        out_specs=pl.BlockSpec((1, 1), lambda n, r: (0, 0)),
        scratch_shapes=[pltpu.VMEM((1, 1), jnp.float32),   # sum(w * nll)
                        pltpu.VMEM((1, 1), jnp.float32)],  # sum(w)
        compiler_params=pltpu.CompilerParams(
            dimension_semantics=("arbitrary", "arbitrary")),
    )(class_weight.astype(jnp.float32),
      density_map.astype(jnp.float32),
      gt_map.astype(jnp.int32))
    return loss[0, 0]


# ----------------------------- CrowdCounter module ----------------------------


class CrowdCounterPallas:
    """JAX/Pallas port of CrowdCounter (models/CC.py) forward pass."""

    def __init__(self, key, in_ch=3, hidden=8):
        k1, k2 = jax.random.split(key, 2)
        # TODO(synk): the exact CCN architecture is selected at runtime via
        # `model_name` from a registry; a small conv stack with the same I/O
        # contract (NCHW in, 2-channel logits out) stands in for it.
        self.w1 = 0.1 * jax.random.normal(k1, (hidden, in_ch, 3, 3), jnp.float32)
        self.b1 = jnp.zeros((hidden,), jnp.float32)
        self.w2 = 0.1 * jax.random.normal(k2, (2, hidden, 3, 3), jnp.float32)
        self.b2 = jnp.zeros((2,), jnp.float32)
        # TODO(synk): LocKernelLayer's exact kernel is unknown; a fixed 5x5
        # all-ones kernel with zero bias is used (only its != 0 support is
        # consumed downstream via .bool().long()).
        self.loc_w = jnp.ones((1, 1, 5, 5), jnp.float32)
        self.loc_b = jnp.zeros((1,), jnp.float32)
        # CrossEntropyLoss2d(torch.FloatTensor([1.0, 100.0]))
        self.class_weight = jnp.array([1.0, 100.0], jnp.float32)
        self.loss_mse = None

    @property
    def loss(self):
        return self.loss_mse

    def ccn(self, img):
        h = conv2d_same(img, self.w1, self.b1, relu=True)
        return conv2d_same(h, self.w2, self.b2, relu=False)

    def forward(self, img, dot_map):
        density_map = self.ccn(img)                             # (N, 2, H, W)
        gt_map = loc_gt_map(dot_map, self.loc_w, self.loc_b)    # (N, 1, H, W) int32
        self.loss_mse = weighted_cross_entropy_2class(          # gt_map.squeeze(1)
            density_map, gt_map, self.class_weight)
        return density_map, gt_map

    def test_forward(self, img):
        return self.ccn(img)


# ----------------------------- pure-JAX reference ------------------------------


def _reference_forward(model, img, dot_map):
    def conv(x, w, b):
        y = jax.lax.conv_general_dilated(
            x, w, window_strides=(1, 1), padding="SAME",
            dimension_numbers=("NCHW", "OIHW", "NCHW"),
            precision=jax.lax.Precision.HIGHEST)
        return y + b.reshape(1, -1, 1, 1)

    h = jnp.maximum(conv(img, model.w1, model.b1), 0.0)
    dm = conv(h, model.w2, model.b2)
    gt = (conv(dot_map, model.loc_w, model.loc_b) != 0).astype(jnp.int32)
    logits = dm.transpose(0, 2, 3, 1).reshape(-1, 2)
    tgt = gt[:, 0].reshape(-1)
    logp = jax.nn.log_softmax(logits, axis=-1)
    lp_t = jnp.take_along_axis(logp, tgt[:, None], axis=-1)[:, 0]
    w_t = model.class_weight[tgt]
    loss = -jnp.sum(w_t * lp_t) / jnp.sum(w_t)
    return dm, gt, loss


# ------------------------------------ main --------------------------------------


if __name__ == "__main__":
    key = jax.random.PRNGKey(0)
    k_img, k_dot, k_param = jax.random.split(key, 3)

    N, C, H, W = 2, 3, 16, 16
    img = jax.random.normal(k_img, (N, C, H, W), jnp.float32)
    dot_map = (jax.random.uniform(k_dot, (N, 1, H, W)) > 0.97).astype(jnp.float32)

    model = CrowdCounterPallas(k_param, in_ch=C, hidden=8)
    density_map, gt_map = model.forward(img, dot_map)
    jax.block_until_ready((density_map, gt_map, model.loss))

    assert density_map.shape == (N, 2, H, W)
    assert gt_map.shape == (N, 1, H, W)
    assert model.loss.shape == ()

    # Cross-check the Pallas pipeline against a pure-JAX/XLA reference.
    dm_ref, gt_ref, loss_ref = _reference_forward(model, img, dot_map)
    assert jnp.allclose(density_map, dm_ref, atol=1e-3, rtol=1e-3)
    assert bool(jnp.all(gt_map == gt_ref))
    assert jnp.allclose(model.loss, loss_ref, atol=1e-3, rtol=1e-3)

    print("KERNEL_OK")
</pallas_src>

<mosaic_0001>
module attributes {stable_mosaic.version = 11 : i64} {
  func.func @_conv_mm_kernel(%arg0: i32, %arg1: i32, %arg2: memref<1x32x256xf32, #tpu.memory_space<vmem>>, %arg3: memref<8x32xf32, #tpu.memory_space<vmem>>, %arg4: memref<8x1xf32, #tpu.memory_space<vmem>>, %arg5: memref<1x8x256xf32, #tpu.memory_space<vmem>>) attributes {dimension_semantics = [#tpu.dimension_semantics<parallel>, #tpu.dimension_semantics<parallel>], iteration_bounds = array<i64: 2, 1>, scalar_prefetch = 0 : i64, scratch_operands = 0 : i64, tpu.core_type = #tpu.core_type<tc>, window_params = [{transform_indices = @transform_0, window_bounds = array<i64: 1, 32, 256>}, {pipeline_mode = #tpu.pipeline_mode<synchronous>, transform_indices = @transform_1, window_bounds = array<i64: 8, 32>}, {pipeline_mode = #tpu.pipeline_mode<synchronous>, transform_indices = @transform_2, window_bounds = array<i64: 8, 1>}, {transform_indices = @transform_3, window_bounds = array<i64: 1, 8, 256>}]} {
    %c0 = arith.constant 0 : index
    %c0_0 = arith.constant 0 : index
    %0 = vector.load %arg3[%c0, %c0_0] : memref<8x32xf32, #tpu.memory_space<vmem>>, vector<8x32xf32>
    %c0_1 = arith.constant 0 : index
    %c0_2 = arith.constant 0 : index
    %c0_3 = arith.constant 0 : index
    %1 = vector.load %arg2[%c0_1, %c0_2, %c0_3] : memref<1x32x256xf32, #tpu.memory_space<vmem>>, vector<1x32x256xf32>
    %2 = vector.shape_cast %1 : vector<1x32x256xf32> to vector<32x256xf32>
    %cst = arith.constant dense<0.000000e+00> : vector<8x256xf32>
    %3 = tpu.matmul %0, %2, %cst {dimension_numbers = #tpu.dot_dimension_numbers<[1], [0], [0], [1], [0, 0, 1, 1], [], []>} : vector<8x32xf32>, vector<32x256xf32>, vector<8x256xf32> -> vector<8x256xf32>
    %c0_4 = arith.constant 0 : index
    %c0_5 = arith.constant 0 : index
    %4 = vector.load %arg4[%c0_4, %c0_5] : memref<8x1xf32, #tpu.memory_space<vmem>>, vector<8x1xf32>
    %5 = vector.broadcast %4 : vector<8x1xf32> to vector<8x256xf32>
    %6 = arith.addf %3, %5 : vector<8x256xf32>
    %cst_6 = arith.constant 0.000000e+00 : f32
    %7 = vector.broadcast %cst_6 : f32 to vector<8x256xf32>
    %8 = arith.maximumf %6, %7 : vector<8x256xf32>
    %c0_7 = arith.constant 0 : index
    %c0_8 = arith.constant 0 : index
    %c0_9 = arith.constant 0 : index
    %9 = vector.load %arg5[%c0_7, %c0_8, %c0_9] : memref<1x8x256xf32, #tpu.memory_space<vmem>>, vector<1x8x256xf32>
    %10 = vector.shape_cast %9 : vector<1x8x256xf32> to vector<8x256xf32>
    %11 = vector.shape_cast %8 : vector<8x256xf32> to vector<1x8x256xf32>
    tpu.vector_store %arg5[%c0_7, %c0_8, %c0_9], %11 {strides = array<i32>} : memref<1x8x256xf32, #tpu.memory_space<vmem>>, vector<1x8x256xf32>,
    return
  }
  func.func @transform_0(%arg0: i32, %arg1: i32) -> (i32, i32, i32) {
    %c0_i32 = arith.constant 0 : i32
    %c0_i32_0 = arith.constant 0 : i32
    return %arg0, %c0_i32, %arg1 : i32, i32, i32
  }
  func.func @transform_1(%arg0: i32, %arg1: i32) -> (i32, i32) {
    %c0_i32 = arith.constant 0 : i32
    %c0_i32_0 = arith.constant 0 : i32
    %c0_i32_1 = arith.constant 0 : i32
    return %c0_i32, %c0_i32_0 : i32, i32
  }
  func.func @transform_2(%arg0: i32, %arg1: i32) -> (i32, i32) {
    %c0_i32 = arith.constant 0 : i32
    %c0_i32_0 = arith.constant 0 : i32
    %c0_i32_1 = arith.constant 0 : i32
    return %c0_i32, %c0_i32_0 : i32, i32
  }
  func.func @transform_3(%arg0: i32, %arg1: i32) -> (i32, i32, i32) {
    %c0_i32 = arith.constant 0 : i32
    %c0_i32_0 = arith.constant 0 : i32
    return %arg0, %c0_i32, %arg1 : i32, i32, i32
  }
}

</mosaic_0001>

<bundles_post_ra>
// kernel: tpu_custom_call.1
= control target key start
LH: loop header
LB: loop body
LE: loop exit
PB: predicated region body
PF: predicated region fallthrough
CT: control target
= control target key end

     0   :  { %8 = vsyncpa [#allocation3], 0  ;;  %s726_s0 = inlined_call_operand.hbm [shape: f32[2,32,256], index: 0, kind: input, shape index: {}]   ;;  %s727_s1 = inlined_call_operand.vmem [shape: f32[8,32], index: 1, kind: input, shape index: {}]   ;;  %s728_s2 = inlined_call_operand.vmem [shape: f32[8,1], index: 2, kind: input, shape index: {}]   ;;  %s729_s3 = inlined_call_operand.hbm [shape: f32[2,8,256], index: 3, kind: output, shape index: {}]  }
   0x1   :  { %10 = vsyncpa [#allocation3 + $0x1], 0 }
   0x2   :  { %11 = vsyncpa [#allocation4], 0 }
   0x3   :  { %13 = vsyncpa [#allocation4 + $0x1], 0  ;;  %s599_s12 = smov 0   ;;  %s601_s13 = smov 0  }
   0x4   :  { %s603_s14 = smov 0   ;;  %s605_s15 = smov 0  }
   0x5   :  { %s607_s16 = smov 0   ;;  %s609_s17 = smov 0  }
   0x6 LB: > { %s377_s18 = sadd.s32 4294967295, %s574_s17   ;;  %s378_s19 = sadd.s32 4294967294, %s574_s17   ;;  %s574_s17 = sphi %s609_s17, %s19_s17   ;;  %s570_s16 = sphi %s607_s16, %s738_s16   ;;  %s566_s15 = sphi %s605_s15, %s737_s15   ;;  %s562_s14 = sphi %s603_s14, %s736_s14   ;;  %s558_s13 = sphi %s601_s13, %s735_s13   ;;  %s554_s12 = sphi %s599_s12, %s734_s12  }
   0x7   : > { %s31_s20 = sadd.s32 1, %s570_s16  ;;  %s40_s21 = sadd.s32 1, %s562_s14 }
   0x8   : > { %p33_p0 = scmp.ge.s32.totalorder %s31_s20, 2  ;;  %p47_p1 = scmp.ne.s32.totalorder %s562_s14, %s558_s13 }
   0x9   : > { %p48_p2 = scmp.eq.s32.totalorder %s574_s17, 0  ;;  %p53_p3 = scmp.ne.s32.totalorder %s558_s13, %s554_s12 }
   0xa   : > { %s740_s20 = smov (%p33_p0, %s31_s20), 0  ;;  %p54_p5 = scmp.eq.s32.totalorder %s377_s18, 0 }
   0xb   : > { %p640_p4 = por %p48_p2, %p47_p1  ;;  %s35_s23 = ssub.s32 %s570_s16, %s740_s20 }
   0xc   : > { %p121_p6 = scmp.eq.s32.totalorder %s377_s18, 1  ;;  %p38_p7 = scmp.eq.s32.totalorder %s35_s23, 0 }
   0xd   : > { %p646_p8 = por %p54_p5, %p53_p3  ;;  %p127_p10 = scmp.eq.s32.totalorder %s378_s19, 1 }
   0xe   : > { %p650_p9 = por %p121_p6, %p47_p1  ;;  %p380_p12 = scmp.ge.s32.totalorder %s574_s17, 2 }
   0xf   : > { %s655_s26 = scalar_select %p38_p7, %s562_s14, %s40_s21  }
  0x10   : > { %p657_p11 = por %p127_p10, %p53_p3  ;;  %p408_p13 = scmp.lt.s32.totalorder %s574_s17, 2 }
  0x11   : > { %s153_s28 = sand.u32 1, %s562_s14   ;;  %s394_s30 = sshll.u32 %s570_s16, 6 }
  0x12   : > { %s381_s29 = sshll.u32 %s153_s28, 6  ;;  %s164_s6 = scalar_lea.hbm %s726_s0, %s394_s30 }
  0x13   : > { %s157_s7 = scalar_lea.vmem [#allocation2], %s381_s29  ;;  %s165_s9 = sshll.u32 %s164_s6, 4  ;;  %s166_s9 = int_to_ptr.hbm [resolvable:$true] %s165_s9 }
  0x14   : > { %s167_s8 = sshll.u32 %s157_s7, 4  ;;  %p401_p0 = pnand %p408_p13, %p640_p4  ;;  %s168_s8 = int_to_ptr.vmem [resolvable:$true] %s167_s8 }
  0x15   : > { %p384_p1 = scmp.ge.s32.totalorder %s574_s17, 1  ;;  %s154_s10 = scalar_lea.sflag [#allocation3], %s153_s28 }
  0x16   : > { %s576_s11 = smov 256   ;;  %s577_s18 = smov 16  }
  0x17   : > { %403 = dma.hbm_to_vmem [thread:$0]  (!%p401_p0), %s166_s9, 1024, %s168_s8, %s154_s10, %s576_s11, %s576_s11, %s577_s18  }
  0x18   : > { %p175_p2 = scmp.lt.s32.totalorder %s574_s17, 3 }
  0x1a   : > { %p176_p3 = pnand %p384_p1, %p175_p2 }
  0x1b   : > { %s673_s19 = sand.u32 (!%p176_p3), 1, %s558_s13  }
  0x1c   : > { %179 = sbr.rel (%p176_p3) target bundleno = 176 (0xb0), region = 32  ;;  %s385_s21 = sshll.u32 (!%p176_p3), %s673_s19, 6 }
  0x1d   : > { %s182_s23 = scalar_lea.sflag (!%p176_p3), [#allocation3], %s673_s19  ;;  %s185_s29 = scalar_lea.vmem (!%p176_p3), [#allocation2], %s385_s21 }
  0x21   : > { %545 = dma.done.wait (%p646_p8), %s182_s23, 1024  }
  0x22   : > { %547 = vsyncadd (%p646_p8), %s182_s23, 4294966272  ;;  %v578_v0 = vmov 0   ;;  %v218_v1 = vld [vmem:[%s185_s29 + $0x30] sm:$0xff]  ;;  %v219_v2 = vld [vmem:[%s185_s29 + $0x38] sm:$0xff]  ;;  %vm226_vm0 = vcmask 261120   ;;  %s386_s4 = sshll.u32 %s673_s19, 4 }
  0x23   : > { %461 = vset.pattern.permute.xlu0 %v578_v0  ;;  %v216_v3 = vld [vmem:[%s185_s29 + $0x20] sm:$0xff]  ;;  %242 = vmatpush.msra.mxu0 %v218_v1  ;;  %v217_v4 = vld [vmem:[%s185_s29 + $0x28] sm:$0xff]  ;;  %v214_v5 = vld [vmem:[%s185_s29 + $0x10] sm:$0xff]  ;;  %s395_s5 = sshll.u32 %s566_s15, 4  ;;  %s208_s9 = scalar_lea.vmem [#allocation5], %s386_s4 }
  0x24   : > { %262 = vmatpush.msra.mxu1 %v219_v2  ;;  %v215_v6 = vld [vmem:[%s185_s29 + $0x18] sm:$0xff]  ;;  %v220_v7 = vld [vmem:[%s728_s2] sm:$0xff]  ;;  %v213_v9 = vld [vmem:[%s185_s29 + $0x8] sm:$0xff]  ;;  %s288_s8 = scalar_lea.hbm %s729_s3, %s395_s5  ;;  %s290_s10 = sshll.u32 %s208_s9, 4  ;;  %s291_s10 = int_to_ptr.vmem [resolvable:$true] %s290_s10 }
  0x25   : > { %243 = vmatpush.msra.mxu0 %v216_v3  ;;  %v212_v8 = vld [vmem:[%s185_s29] sm:$0xff]  ;;  %223 = vperm.xlu0 %461, %v220_v7   ;;  %s292_s11 = sshll.u32 %s288_s8, 4  ;;  %s275_s15 = scalar_lea.sflag [#allocation4], %s673_s19  ;;  %s293_s11 = int_to_ptr.hbm [resolvable:$true] %s292_s11 }
  0x26   : > { %263 = vmatpush.msra.mxu1 %v217_v4  ;;  %v211_v10 = vld [vmem:[%s727_s1] sm:$0xff]  ;;  %s506_s18 = sshra.s32 %s293_s11, 4  ;;  %s512_s22 = scalar_lea.hbm %s729_s3, 32  ;;  %s507_s18 = int_to_ptr.hbm [resolvable:$true] %s506_s18 }
  0x27   : > { %244 = vmatpush.msra.mxu0 %v214_v5  ;;  %s508_s21 = scalar_lea.hbm %s507_s18, 16  ;;  %p513_p7 = scmp.lt.s32.totalorder %s507_s18, %s729_s3 }
  0x28   : > { %264 = vmatpush.msra.mxu1 %v215_v6  ;;  %p509_p4 = scmp.ne.s32.totalorder %s507_s18, %s508_s21  ;;  %p514_p8 = scmp.lt.s32.totalorder %s512_s22, %s508_s21 }
  0x29   : > { %245 = vmatpush.msra.mxu0 %v212_v8 }
  0x2a   : > { %265 = vmatpush.msra.mxu1 %v213_v9  ;;  %387 = vmatmul.msk.f32.vlgmr.msra.gmra.mxu0 %vm226_vm0, %v211_v10  ;;  %p510_p5 = pnand %p509_p4, %p650_p9  ;;  %p515_p10 = por %p514_p8, %p513_p7 }
  0x2b   : > { %388 = vmatmul.msk.f32.vlgmr.msra.gmra.mxu1 %vm226_vm0, %v211_v10 }
  0x2c   : > { %p511_p6 = pneg %p510_p5 }
  0x2e   : > { %p516_p13 = pnand %p515_p10, %p511_p6 }
  0x97   : > { %v224_v11 = vpop.permute.xlu0 %223 }
  0xa7   : > { %v247_v12 = vpop.f32.mrf.mxu0 }
  0xa8   : > { %v267_v13 = vpop.f32.mrf.mxu1  ;;  %v248_v14 = vadd.f32 %v247_v12, %v224_v11 }
  0xa9   : > { %v268_v15 = vadd.f32 %v267_v13, %v224_v11 }
  0xaa   : > { %v270_v16 = vmax.f32 %v248_v14, 0.0 }
  0xab   : > { %v271_v17 = vmax.f32 %v268_v15, 0.0 }
  0xac   : > { %272 = vst [vmem:[%s208_s9] sm:$0xff] %v270_v16 }
  0xad   : > { %273 = vst [vmem:[%s208_s9 + $0x8] sm:$0xff] %v271_v17 }
  0xae   : > { %519 = shalt.err (!%p516_p13)
}
  0xaf   : > { %398 = dma.vmem_to_hbm [thread:$0]  (%p650_p9), %s291_s10, 256, %s293_s11, %s275_s15  }
  0xb0 PF: > { %s304_s19 = sand.u32 1, %s554_s12   ;;  %p405_p0 = pnand %p380_p12, %p657_p11 }
  0xb1   : > { %s305_s30 = scalar_lea.sflag [#allocation4], %s304_s19 }
  0xb2   : > { %p406_p1 = pneg %p405_p0 }
  0xb4   : > { %549 = dma.done.wait (%p406_p1), %s305_s30, 256  }
  0xb5   : > { %551 = vsyncadd (%p406_p1), %s305_s30, 4294967040  ;;  %s19_s17 = sadd.s32 1, %s574_s17   ;;  %s734_s12 = smov %s558_s13 }
  0xb6   : > { %p16_p2 = scmp.ge.s32.totalorder %s19_s17, 4   ;;  %s735_s13 = smov %s562_s14 }
  0xb7   : > { %s736_s14 = smov %s655_s26  ;;  %s737_s15 = smov %s570_s16 }
  0xb8   : > { %s738_s16 = smov %s740_s20  ;;  %18 = sbr.rel (!%p16_p2) target bundleno = 6 (0x6), region = 77 }
  0xbd   :  { %311 = vsyncpa [#allocation3], 1 }
  0xbe   :  { %313 = vsyncpa [#allocation3 + $0x1], 1 }
  0xbf   :  { %314 = vsyncpa [#allocation4], 1 }
  0xc0   :  { %316 = vsyncpa [#allocation4 + $0x1], 1 }

</bundles_post_ra>
